<compile_context>
chip_gen: v5e
topology: v5e:2x2
jax: 0.10.0
libtpu: 0.0.40
codegen_flags: <defaults>
</compile_context>

<pallas_src>
import jax
import jax.numpy as jnp
from jax import lax
from jax.experimental import pallas as pl


def _gelu(x):
    # tanh-approximate GELU (PyTorch nn.GELU(approximate='tanh')); used in kernel AND reference.
    return 0.5 * x * (1.0 + jnp.tanh(0.7978845608028654 * (x + 0.044715 * x * x * x)))


def deepset_kernel(x_ref, valid_ref,
                   w1_ref, b1_ref,      # ffn1: Linear(F -> D)
                   w2_ref, b2_ref,      # ffn2 layer 1: Linear(D -> D)
                   w3_ref, b3_ref,      # ffn2 final:   Linear(D -> D)
                   out_ref):
    BS, _ = x_ref.shape                 # B*S rows, 2D throughout (no in-kernel reshape)
    B, D = out_ref.shape
    S = BS // B

    # --- ffn1: Linear + GELU, one MXU dot over all B*S rows (bf16 operands, f32 accum) ---
    h = jnp.dot(x_ref[...], w1_ref[...],
                preferred_element_type=jnp.float32) + b1_ref[...]     # [BS, D] f32
    h = _gelu(h)                                                      # f32 elementwise (v5e-safe)

    # --- mol_aggregation: masked mean pool over S as a block-diagonal MXU contraction ---
    valid = valid_ref[...]                                            # [1, BS] lane-dense, f32
    col = lax.broadcasted_iota(jnp.int32, (B, BS), 1)                 # flat row index r
    row = lax.broadcasted_iota(jnp.int32, (B, BS), 0)                 # output batch index b
    lo = row * S
    own = jnp.logical_and(col >= lo, col < lo + S).astype(jnp.float32)  # [B, BS] block-diagonal
    pool = own * valid                                                # [B, BS]
    counts = jnp.sum(pool, axis=-1, keepdims=True)                    # [B, 1]
    inv_counts = pl.reciprocal(jnp.maximum(counts, 1.0), approx=True)  # EUP, not VPU divide
    pooled = jnp.dot(pool.astype(jnp.bfloat16), h.astype(jnp.bfloat16),
                     preferred_element_type=jnp.float32) * inv_counts  # [B, D]

    # --- ffn2: Linear + GELU + Linear (bf16 operands, f32 accum) ---
    g = _gelu(jnp.dot(pooled.astype(jnp.bfloat16), w2_ref[...],
                      preferred_element_type=jnp.float32) + b2_ref[...])
    out = jnp.dot(g.astype(jnp.bfloat16), w3_ref[...],
                  preferred_element_type=jnp.float32) + b3_ref[...]

    out_ref[...] = out.astype(out_ref.dtype)


def deepset_forward(x, key_padding_mask, params):
    """x: [B, S, F] float32, key_padding_mask: [B, S] bool (True == padding)."""
    B, S, F = x.shape
    D = params["w1"].shape[1]

    # Wrapper-side layout plumbing (free): flatten to 2D, bf16 storage for matmul operands,
    # lane-dense [1, B*S] validity mask (no last-dim-1 VMEM block).
    x2d = x.reshape(B * S, F).astype(jnp.bfloat16)
    valid = (1.0 - key_padding_mask.astype(jnp.float32)).reshape(1, B * S)

    w1 = params["w1"].astype(jnp.bfloat16)
    w2 = params["w2"].astype(jnp.bfloat16)
    w3 = params["w3"].astype(jnp.bfloat16)
    b1, b2, b3 = params["b1"], params["b2"], params["b3"]             # biases stay f32

    def full(shape):
        # whole-array single VMEM block (no grid -> index_map takes no args);
        # block shape == full array dims, so the (8,128) divisibility rule is satisfied.
        return pl.BlockSpec(shape, lambda: (0,) * len(shape))

    return pl.pallas_call(
        deepset_kernel,
        out_shape=jax.ShapeDtypeStruct((B, D), jnp.float32),
        in_specs=[
            full(x2d.shape), full(valid.shape),
            full(w1.shape), full(b1.shape),
            full(w2.shape), full(b2.shape),
            full(w3.shape), full(b3.shape),
        ],
        out_specs=full((B, D)),
    )(x2d, valid, w1, b1, w2, b2, w3, b3)


def reference_forward(x, key_padding_mask, params):
    """Pure-JAX f32 reference mirroring the PyTorch DeepSet semantics."""
    h = _gelu(x @ params["w1"] + params["b1"])                        # [B, S, D]
    valid = 1.0 - key_padding_mask.astype(jnp.float32)                # [B, S]
    pooled = jnp.sum(h * valid[..., None], axis=1) / jnp.maximum(
        jnp.sum(valid, axis=1, keepdims=True), 1.0)                   # [B, D]
    g = _gelu(pooled @ params["w2"] + params["b2"])
    return g @ params["w3"] + params["b3"]


def init_params(key, F, D):
    ks = jax.random.split(key, 6)

    def w(k, shape, scale=0.1):
        return (jax.random.normal(k, shape) * scale).astype(jnp.float32)

    return dict(
        w1=w(ks[0], (F, D)), b1=w(ks[1], (1, D)),
        w2=w(ks[2], (D, D)), b2=w(ks[3], (1, D)),
        w3=w(ks[4], (D, D)), b3=w(ks[5], (1, D)),
    )


if __name__ == "__main__":
    B, S, F, D = 2, 8, 16, 32      # batch, set size (molecules per mixture), mol features, embed_dim

    key = jax.random.PRNGKey(0)
    kx, kp = jax.random.split(key)

    x = jax.random.normal(kx, (B, S, F), jnp.float32)
    # last two set slots of batch 1 are padding
    key_padding_mask = jnp.zeros((B, S), jnp.bool_).at[1, S - 2:].set(True)

    params = init_params(kp, F, D)

    out = deepset_forward(x, key_padding_mask, params)
    out = jax.block_until_ready(out)

    ref = reference_forward(x, key_padding_mask, params)
    assert out.shape == (B, D)
    # bf16 storage + approx reciprocal in the kernel vs f32 reference -> loosened tolerance.
    assert jnp.allclose(out, ref, rtol=2e-2, atol=2e-2), (out, ref)

    print("KERNEL_OK")
</pallas_src>

<mosaic_0001>
module attributes {stable_mosaic.version = 11 : i64} {
  func.func @deepset_kernel(%arg0: memref<16x16xbf16, #tpu.memory_space<vmem>>, %arg1: memref<1x16xf32, #tpu.memory_space<vmem>>, %arg2: memref<16x32xbf16, #tpu.memory_space<vmem>>, %arg3: memref<1x32xf32, #tpu.memory_space<vmem>>, %arg4: memref<32x32xbf16, #tpu.memory_space<vmem>>, %arg5: memref<1x32xf32, #tpu.memory_space<vmem>>, %arg6: memref<32x32xbf16, #tpu.memory_space<vmem>>, %arg7: memref<1x32xf32, #tpu.memory_space<vmem>>, %arg8: memref<2x32xf32, #tpu.memory_space<vmem>>) attributes {dimension_semantics = [], scalar_prefetch = 0 : i64, scratch_operands = 0 : i64, tpu.core_type = #tpu.core_type<tc>} {
    %c0 = arith.constant 0 : index
    %c0_0 = arith.constant 0 : index
    %0 = vector.load %arg0[%c0, %c0_0] : memref<16x16xbf16, #tpu.memory_space<vmem>>, vector<16x16xbf16>
    %c0_1 = arith.constant 0 : index
    %c0_2 = arith.constant 0 : index
    %1 = vector.load %arg2[%c0_1, %c0_2] : memref<16x32xbf16, #tpu.memory_space<vmem>>, vector<16x32xbf16>
    %cst = arith.constant dense<0.000000e+00> : vector<16x32xf32>
    %2 = tpu.matmul %0, %1, %cst {dimension_numbers = #tpu.dot_dimension_numbers<[1], [0], [0], [1], [0, 0, 1, 1], [], []>} : vector<16x16xbf16>, vector<16x32xbf16>, vector<16x32xf32> -> vector<16x32xf32>
    %c0_3 = arith.constant 0 : index
    %c0_4 = arith.constant 0 : index
    %3 = vector.load %arg3[%c0_3, %c0_4] : memref<1x32xf32, #tpu.memory_space<vmem>>, vector<1x32xf32>
    %4 = vector.broadcast %3 : vector<1x32xf32> to vector<16x32xf32>
    %5 = arith.addf %2, %4 : vector<16x32xf32>
    %cst_5 = arith.constant 5.000000e-01 : f32
    %6 = vector.broadcast %cst_5 : f32 to vector<16x32xf32>
    %7 = arith.mulf %6, %5 : vector<16x32xf32>
    %cst_6 = arith.constant 4.471500e-02 : f32
    %8 = vector.broadcast %cst_6 : f32 to vector<16x32xf32>
    %9 = arith.mulf %8, %5 : vector<16x32xf32>
    %10 = arith.mulf %9, %5 : vector<16x32xf32>
    %11 = arith.mulf %10, %5 : vector<16x32xf32>
    %12 = arith.addf %5, %11 : vector<16x32xf32>
    %cst_7 = arith.constant 0.797884583 : f32
    %13 = vector.broadcast %cst_7 : f32 to vector<16x32xf32>
    %14 = arith.mulf %13, %12 : vector<16x32xf32>
    %15 = math.tanh %14 : vector<16x32xf32>
    %cst_8 = arith.constant 1.000000e+00 : f32
    %16 = vector.broadcast %cst_8 : f32 to vector<16x32xf32>
    %17 = arith.addf %16, %15 : vector<16x32xf32>
    %18 = arith.mulf %7, %17 : vector<16x32xf32>
    %c0_9 = arith.constant 0 : index
    %c0_10 = arith.constant 0 : index
    %19 = vector.load %arg1[%c0_9, %c0_10] : memref<1x16xf32, #tpu.memory_space<vmem>>, vector<1x16xf32>
    %20 = tpu.iota {dimensions = array<i32: 1>} : vector<2x16xi32>
    %21 = tpu.iota {dimensions = array<i32: 0>} : vector<2x16xi32>
    %c8_i32 = arith.constant 8 : i32
    %22 = vector.broadcast %c8_i32 : i32 to vector<2x16xi32>
    %23 = arith.muli %21, %22 : vector<2x16xi32>
    %24 = arith.cmpi sge, %20, %23 : vector<2x16xi32>
    %c8_i32_11 = arith.constant 8 : i32
    %25 = vector.broadcast %c8_i32_11 : i32 to vector<2x16xi32>
    %26 = arith.addi %23, %25 : vector<2x16xi32>
    %27 = arith.cmpi slt, %20, %26 : vector<2x16xi32>
    %28 = arith.andi %24, %27 : vector<2x16xi1>
    %29 = arith.extui %28 : vector<2x16xi1> to vector<2x16xi32>
    %30 = arith.sitofp %29 : vector<2x16xi32> to vector<2x16xf32>
    %31 = vector.broadcast %19 : vector<1x16xf32> to vector<2x16xf32>
    %32 = arith.mulf %30, %31 : vector<2x16xf32>
    %cst_12 = arith.constant dense<0.000000e+00> : vector<2xf32>
    %33 = vector.multi_reduction <add>, %32, %cst_12 [1] : vector<2x16xf32> to vector<2xf32>
    %34 = vector.shape_cast %33 : vector<2xf32> to vector<2x1xf32>
    %cst_13 = arith.constant 1.000000e+00 : f32
    %35 = vector.broadcast %cst_13 : f32 to vector<2x1xf32>
    %36 = arith.maximumf %34, %35 : vector<2x1xf32>
    %37 = tpu.reciprocal %36 {approx = true} : vector<2x1xf32> -> vector<2x1xf32>
    %38 = arith.truncf %32 : vector<2x16xf32> to vector<2x16xbf16>
    %39 = arith.truncf %18 : vector<16x32xf32> to vector<16x32xbf16>
    %cst_14 = arith.constant dense<0.000000e+00> : vector<2x32xf32>
    %40 = tpu.matmul %38, %39, %cst_14 {dimension_numbers = #tpu.dot_dimension_numbers<[1], [0], [0], [1], [0, 0, 1, 1], [], []>} : vector<2x16xbf16>, vector<16x32xbf16>, vector<2x32xf32> -> vector<2x32xf32>
    %41 = vector.broadcast %37 : vector<2x1xf32> to vector<2x32xf32>
    %42 = arith.mulf %40, %41 : vector<2x32xf32>
    %43 = arith.truncf %42 : vector<2x32xf32> to vector<2x32xbf16>
    %c0_15 = arith.constant 0 : index
    %c0_16 = arith.constant 0 : index
    %44 = vector.load %arg4[%c0_15, %c0_16] : memref<32x32xbf16, #tpu.memory_space<vmem>>, vector<32x32xbf16>
    %cst_17 = arith.constant dense<0.000000e+00> : vector<2x32xf32>
    %45 = tpu.matmul %43, %44, %cst_17 {dimension_numbers = #tpu.dot_dimension_numbers<[1], [0], [0], [1], [0, 0, 1, 1], [], []>} : vector<2x32xbf16>, vector<32x32xbf16>, vector<2x32xf32> -> vector<2x32xf32>
    %c0_18 = arith.constant 0 : index
    %c0_19 = arith.constant 0 : index
    %46 = vector.load %arg5[%c0_18, %c0_19] : memref<1x32xf32, #tpu.memory_space<vmem>>, vector<1x32xf32>
    %47 = vector.broadcast %46 : vector<1x32xf32> to vector<2x32xf32>
    %48 = arith.addf %45, %47 : vector<2x32xf32>
    %cst_20 = arith.constant 5.000000e-01 : f32
    %49 = vector.broadcast %cst_20 : f32 to vector<2x32xf32>
    %50 = arith.mulf %49, %48 : vector<2x32xf32>
    %cst_21 = arith.constant 4.471500e-02 : f32
    %51 = vector.broadcast %cst_21 : f32 to vector<2x32xf32>
    %52 = arith.mulf %51, %48 : vector<2x32xf32>
    %53 = arith.mulf %52, %48 : vector<2x32xf32>
    %54 = arith.mulf %53, %48 : vector<2x32xf32>
    %55 = arith.addf %48, %54 : vector<2x32xf32>
    %cst_22 = arith.constant 0.797884583 : f32
    %56 = vector.broadcast %cst_22 : f32 to vector<2x32xf32>
    %57 = arith.mulf %56, %55 : vector<2x32xf32>
    %58 = math.tanh %57 : vector<2x32xf32>
    %cst_23 = arith.constant 1.000000e+00 : f32
    %59 = vector.broadcast %cst_23 : f32 to vector<2x32xf32>
    %60 = arith.addf %59, %58 : vector<2x32xf32>
    %61 = arith.mulf %50, %60 : vector<2x32xf32>
    %62 = arith.truncf %61 : vector<2x32xf32> to vector<2x32xbf16>
    %c0_24 = arith.constant 0 : index
    %c0_25 = arith.constant 0 : index
    %63 = vector.load %arg6[%c0_24, %c0_25] : memref<32x32xbf16, #tpu.memory_space<vmem>>, vector<32x32xbf16>
    %cst_26 = arith.constant dense<0.000000e+00> : vector<2x32xf32>
    %64 = tpu.matmul %62, %63, %cst_26 {dimension_numbers = #tpu.dot_dimension_numbers<[1], [0], [0], [1], [0, 0, 1, 1], [], []>} : vector<2x32xbf16>, vector<32x32xbf16>, vector<2x32xf32> -> vector<2x32xf32>
    %c0_27 = arith.constant 0 : index
    %c0_28 = arith.constant 0 : index
    %65 = vector.load %arg7[%c0_27, %c0_28] : memref<1x32xf32, #tpu.memory_space<vmem>>, vector<1x32xf32>
    %66 = vector.broadcast %65 : vector<1x32xf32> to vector<2x32xf32>
    %67 = arith.addf %64, %66 : vector<2x32xf32>
    %c0_29 = arith.constant 0 : index
    %c0_30 = arith.constant 0 : index
    %68 = vector.load %arg8[%c0_29, %c0_30] : memref<2x32xf32, #tpu.memory_space<vmem>>, vector<2x32xf32>
    tpu.vector_store %arg8[%c0_29, %c0_30], %67 {strides = array<i32>} : memref<2x32xf32, #tpu.memory_space<vmem>>, vector<2x32xf32>,
    return
  }
}

</mosaic_0001>

<bundles_post_ra>
// kernel: tpu_custom_call.1
= control target key start
LH: loop header
LB: loop body
LE: loop exit
PB: predicated region body
PF: predicated region fallthrough
CT: control target
= control target key end

     0   :  { %13 = vsyncpa [#allocation3], 0  ;;  %s601_s0 = inlined_call_operand.hbm [shape: bf16[16,16], index: 0, kind: input, shape index: {}]   ;;  %s602_s1 = inlined_call_operand.hbm [shape: f32[1,16], index: 1, kind: input, shape index: {}]   ;;  %s603_s2 = inlined_call_operand.hbm [shape: bf16[16,32], index: 2, kind: input, shape index: {}]   ;;  %s604_s3 = inlined_call_operand.vmem [shape: f32[1,32], index: 3, kind: input, shape index: {}]   ;;  %s605_s4 = inlined_call_operand.hbm [shape: bf16[32,32], index: 4, kind: input, shape index: {}]   ;;  %s606_s5 = inlined_call_operand.vmem [shape: f32[1,32], index: 5, kind: input, shape index: {}]   ;;  %s607_s6 = inlined_call_operand.hbm [shape: bf16[32,32], index: 6, kind: input, shape index: {}]   ;;  %s608_s7 = inlined_call_operand.vmem [shape: f32[1,32], index: 7, kind: input, shape index: {}]   ;;  %s609_s8 = inlined_call_operand.hbm [shape: f32[2,32], index: 8, kind: output, shape index: {}]  }
   0x1   :  { %14 = vsyncpa [#allocation6], 0 }
   0x2   :  { %15 = vsyncpa [#allocation9], 0  ;;  %s35_s29 = sshll.u32 %s602_s1, 4  ;;  %s36_s29 = int_to_ptr.hbm [resolvable:$true] %s35_s29 }
   0x3   :  { %16 = vsyncpa [#allocation4], 0  ;;  %s516_s30 = smov [#allocation5]   ;;  %s60_s12 = sshll.u32 %s605_s4, 4  ;;  %s61_s12 = int_to_ptr.hbm [resolvable:$true] %s60_s12 }
   0x4   :  { %s37_s9 = sshll.u32 %s516_s30, 4  ;;  %s517_s13 = smov [#allocation8]   ;;  %s38_s9 = int_to_ptr.vmem [resolvable:$true] %s37_s9 }
   0x5   :  { %40 = dma.hbm_to_vmem [thread:$0]  %s36_s29, 16, %s38_s9, [#allocation6]  }
   0x6   :  { %s62_s14 = sshll.u32 %s517_s13, 4  ;;  %s21_s17 = sshll.u32 %s601_s0, 4  ;;  %s63_s14 = int_to_ptr.vmem [resolvable:$true] %s62_s14  ;;  %s22_s17 = int_to_ptr.hbm [resolvable:$true] %s21_s17 }
   0x7   :  { %s518_s1 = smov 64   ;;  %s519_s18 = smov 4  }
   0x8   :  { %68 = dma.hbm_to_vmem [thread:$0]  %s61_s12, 256, %s63_s14, [#allocation9], %s518_s1, %s518_s1, %s519_s18  }
   0x9   :  { %s45_s21 = sshll.u32 %s603_s2, 4  ;;  %s520_s22 = smov [#allocation2]   ;;  %s46_s21 = int_to_ptr.hbm [resolvable:$true] %s45_s21 }
   0xa   :  { %s23_s23 = sshll.u32 %s520_s22, 4  ;;  %s521_s4 = smov [#allocation7]   ;;  %s24_s23 = int_to_ptr.vmem [resolvable:$true] %s23_s23 }
   0xb   :  { %29 = dma.hbm_to_vmem [thread:$0]  %s22_s17, 128, %s24_s23, [#allocation3], %s518_s1, %s518_s1, %s519_s18  }
   0xc   :  { %s47_s24 = sshll.u32 %s521_s4, 4  ;;  %s75_s0 = sshll.u32 %s607_s6, 4  ;;  %s48_s24 = int_to_ptr.vmem [resolvable:$true] %s47_s24  ;;  %s76_s0 = int_to_ptr.hbm [resolvable:$true] %s75_s0 }
   0xd   :  { %53 = dma.hbm_to_vmem [thread:$0]  %s46_s21, 128, %s48_s24, [#allocation6], %s518_s1, %s518_s1, %s519_s18  }
   0xe   :  { %s522_s27 = smov [#allocation10]  }
   0xf   :  { %s77_s28 = sshll.u32 %s522_s27, 4  ;;  %s78_s28 = int_to_ptr.vmem [resolvable:$true] %s77_s28 }
  0x10   :  { %83 = dma.hbm_to_vmem [thread:$0]  %s76_s0, 256, %s78_s28, [#allocation9], %s518_s1, %s518_s1, %s519_s18  }
  0x11   :  { %508 = dma.done.wait [#allocation3], 128  }
  0x12   :  { %509 = vsyncadd [#allocation3], 4294967168 }
  0x13   :  { %510 = dma.done.wait [#allocation6], 144  }
  0x14   :  { %511 = vsyncadd [#allocation6], 4294967152 }
  0x15   :  { %512 = dma.done.wait [#allocation9], 512  }
  0x16   :  { %513 = vsyncadd [#allocation9], 4294966784  ;;  %v338_v0 = vld [vmem:[#allocation7] sm:$0xff]  ;;  %v337_v1 = vld [vmem:[#allocation2] sm:$0xff]  ;;  %vm126_vm0 = vcmask 130048   ;;  %v163_v2 = vlaneseq  ;;  %v523_v10 = vmov 0.0  }
  0x17   :  { %137 = vmatpush.bf16.msra.mxu0 %v338_v0  ;;  %v352_v7 = vld [vmem:[%s604_s3] ss:$0 sm:$0xff]  ;;  %v353_v8 = vld [vmem:[#allocation5] ss:$0 sm:$0xff]  ;;  %vm178_vm4 = vcmask 123904   ;;  %v339_v38 = vld [vmem:[#allocation8] sm:$0xff] }
  0x18   :  { %v166_v3 = vshrl.u32 %v163_v2, 7  ;;  %v164_v5 = vand.u32 127, %v163_v2  ;;  %v340_v37 = vld [vmem:[#allocation8 + $0x8] sm:$0xff]  ;;  %vm224_vm5 = vcmask 261120   ;;  %v342_v46 = vld [vmem:[#allocation10 + $0x8] sm:$0xff]  ;;  %v341_v47 = vld [vmem:[#allocation10] sm:$0xff] }
  0x19   :  { %234 = vmatpush.bf16.msra.mxu2 %v340_v37  ;;  %280 = vmatpush.bf16.msra.mxu3 %v342_v46  ;;  %v354_v48 = vld [vmem:[%s606_s5] ss:$0 sm:$0xff]  ;;  %s524_s5 = smov [#allocation11]   ;;  %s296_s13 = sshll.u32 %s609_s8, 4  ;;  %vm287_vm6 = vcmask 254976   ;;  %s297_s13 = int_to_ptr.hbm [resolvable:$true] %s296_s13 }
  0x1a   :  { %316 = vmatmul.msk.bf16.vlgmr.msra.gmra.mxu0 %vm126_vm0, %v337_v1  ;;  %v167_v4 = vmul.u32 8, %v166_v3  ;;  %v355_v62 = vld [vmem:[%s608_s7] ss:$0 sm:$0xff]  ;;  %s294_s10 = sshll.u32 %s524_s5, 4  ;;  %s295_s10 = int_to_ptr.vmem [resolvable:$true] %s294_s10 }
  0x1c   :  { %v169_v6 = vadd.s32 8, %v167_v4  ;;  %vm168_vm1 = vcmp.ge.s32.totalorder %v164_v5, %v167_v4 }
  0x1d   :  { %235 = vmatpush.bf16.msra.mxu2 %v339_v38  ;;  %281 = vmatpush.bf16.msra.mxu3 %v341_v47 }
  0x1e   :  { %vm170_vm2 = vcmp.lt.s32.totalorder %v164_v5, %v169_v6 }
  0x1f   :  { %vm171_vm3 = vmand %vm168_vm1, %vm170_vm2 }
  0x20   :  { %v317_v11 = vsel %vm171_vm3, 1.0, %v523_v10 }
  0x21   :  { %v177_v14 = vmul.f32 %v353_v8, %v317_v11 }
  0x23   :  { %v179_v16 = vsel %vm178_vm4, %v177_v14, 0.0  ;;  %v184_v36 = vpack.c.bf16 %v177_v14, %v177_v14 }
  0x24   :  { %180 = vadd.xlane.f32.xlu0 %v179_v16 }
  0x97   :  { %v139_v9 = vpop.f32.mrf.mxu0  ;;  %v181_v39 = vpop.xlane.xlu0 %180 }
  0x98   :  { %v140_v12 = vadd.f32 %v352_v7, %v139_v9  ;;  %v182_v40 = vmax.f32 %v181_v39, 1.0 }
  0x9a   :  { %v146_v13 = vmul.f32 0.044715, %v140_v12  ;;  %v144_v30 = vmul.f32 0.5, %v140_v12 }
  0x9c   :  { %v148_v15 = vmul.f32 %v146_v13, %v140_v12 }
  0x9e   :  { %v150_v17 = vmul.f32 %v148_v15, %v140_v12 }
  0x9f   :  { %v141_v18 = vpop.f32.mrf.mxu0 }
  0xa0   :  { %v142_v19 = vadd.f32 %v352_v7, %v141_v18  ;;  %v152_v20 = vadd.f32 %v150_v17, %v140_v12 }
  0xa2   :  { %v147_v21 = vmul.f32 0.044715, %v142_v19  ;;  %v154_v23 = vmul.f32 0.7978846, %v152_v20  ;;  %v145_v31 = vmul.f32 0.5, %v142_v19 }
  0xa4   :  { %v149_v22 = vmul.f32 %v147_v21, %v142_v19  ;;  %356 = vtanh.f32 %v154_v23 }
  0xa6   :  { %v151_v24 = vmul.f32 %v149_v22, %v142_v19 }
  0xa8   :  { %v153_v25 = vadd.f32 %v151_v24, %v142_v19 }
  0xaa   :  { %v155_v26 = vmul.f32 0.7978846, %v153_v25  ;;  %v357_v27 = vpop.eup %356 }
  0xab   :  { %v158_v28 = vadd.f32 1.0, %v357_v27 }
  0xac   :  { %358 = vtanh.f32 %v155_v26 }
  0xad   :  { %v160_v33 = vmul.f32 %v158_v28, %v144_v30  ;;  %360 = vrcp.f32 %v182_v40 }
  0xb2   :  { %v359_v29 = vpop.eup %358 }
  0xb3   :  { %v159_v32 = vadd.f32 1.0, %v359_v29  ;;  %v361_v41 = vpop.eup %360 }
  0xb5   :  { %v161_v34 = vmul.f32 %v159_v32, %v145_v31 }
  0xb7   :  { %v185_v35 = vpack.c.bf16 %v161_v34, %v160_v33 }
  0xb9   :  { %196 = vmatpush.bf16.msra.mxu1 %v185_v35 }
  0xbc   :  { %318 = vmatmul.msk.bf16.vlgmr.msra.gmra.mxu1 %vm126_vm0, %v184_v36 }
 0x139   :  { %v198_v42 = vpop.f32.mrf.mxu1 }
 0x13a   :  { %v202_v43 = vmul.f32 %v361_v41, %v198_v42 }
 0x13c   :  { %v203_v44 = vpack.c.bf16 %v202_v43, %v202_v43 }
 0x13e   :  { %327 = vmatmul.msk.bf16.vlgmr.msra.gmra.mxu2 %vm224_vm5, %v203_v44 }
 0x141   :  { %v200_v45 = vpop.f32.mrf.mxu1 }
 0x1c1   :  { %v237_v49 = vpop.f32.mrf.mxu2 }
 0x1c2   :  { %v238_v50 = vadd.f32 %v354_v48, %v237_v49 }
 0x1c4   :  { %v242_v51 = vmul.f32 0.044715, %v238_v50  ;;  %v241_v58 = vmul.f32 0.5, %v238_v50 }
 0x1c6   :  { %v243_v52 = vmul.f32 %v242_v51, %v238_v50 }
 0x1c8   :  { %v244_v53 = vmul.f32 %v243_v52, %v238_v50 }
 0x1c9   :  { %v239_v54 = vpop.f32.mrf.mxu2 }
 0x1ca   :  { %v245_v55 = vadd.f32 %v244_v53, %v238_v50 }
 0x1cc   :  { %v246_v56 = vmul.f32 0.7978846, %v245_v55 }
 0x1ce   :  { %362 = vtanh.f32 %v246_v56 }
 0x1d4   :  { %v363_v57 = vpop.eup %362 }
 0x1d5   :  { %v248_v59 = vadd.f32 1.0, %v363_v57 }
 0x1d7   :  { %v249_v60 = vmul.f32 %v248_v59, %v241_v58 }
 0x1d9   :  { %v250_v61 = vpack.c.bf16 %v249_v60, %v249_v60 }
 0x1db   :  { %336 = vmatmul.msk.bf16.vlgmr.msra.gmra.mxu3 %vm224_vm5, %v250_v61 }
 0x25e   :  { %v283_v63 = vpop.f32.mrf.mxu3 }
 0x25f   :  { %v284_v0 = vadd.f32 %v355_v62, %v283_v63 }
 0x261   :  { %288 = vst.msk [vmem:[#allocation11] sm:$0x3] %vm287_vm6, %v284_v0 }
 0x262   :  { %299 = dma.vmem_to_hbm [thread:$0]  %s295_s10, 32, %s297_s13, [#allocation4]  }
 0x266   :  { %v285_v1 = vpop.f32.mrf.mxu3 }
 0x267   :  { %514 = dma.done.wait [#allocation4], 32  }
 0x268   :  { %515 = vsyncadd [#allocation4], 4294967264 }
 0x269   :  { %304 = vsyncpa [#allocation3], 1 }
 0x26a   :  { %305 = vsyncpa [#allocation6], 1 }
 0x26b   :  { %306 = vsyncpa [#allocation9], 1 }
 0x26c   :  { %307 = vsyncpa [#allocation4], 1 }

</bundles_post_ra>
